<compile_context>
chip_gen: v7x
topology: tpu7x:2x2x1
jax: 0.10.0
libtpu: 0.0.40
codegen_flags: <defaults>
</compile_context>

<pallas_src>
import jax
import jax.numpy as jnp
from jax.experimental import pallas as pl
from jax.experimental.pallas import tpu as pltpu


# Fixed hidden widths from the module definition.
H1 = 128          # 64 (state branch) + 64 (action branch), produced fused
H2 = 256          # shared hidden width
TB_MAX = 2048     # max batch-tile rows; comfortably inside VMEM on all gens


def _round_up(x, m):
    return ((x + m - 1) // m) * m


def _cdiv(a, b):
    return -(-a // b)


def critic_kernel(s_ref, a_ref, w_s_ref, w_a_ref, w1_ref, w2_ref, b_ref, out_ref):
    """One batch tile: split-K fused first layer -> shared layer -> padded out layer."""
    # Packed f32 biases: [ b_sa (H1) | b1 (H2) | b2_pad (rest) ]  (lane-aligned slices)
    b_sa = b_ref[:, 0:H1]
    b1 = b_ref[:, H1:H1 + H2]
    b2 = b_ref[:, H1 + H2:]

    # bf16 operands, f32 accumulation.
    s = s_ref[...].astype(jnp.bfloat16)
    a = a_ref[...].astype(jnp.bfloat16)

    # Fused state/action layer as a split-K accumulation (no concat anywhere):
    #   state @ [Ws | 0] + action @ [0 | Wa]  ==  [state@Ws | action@Wa]
    h0 = (jnp.dot(s, w_s_ref[...], preferred_element_type=jnp.float32)
          + jnp.dot(a, w_a_ref[...], preferred_element_type=jnp.float32)
          + b_sa)
    h0 = jnp.maximum(h0, 0.0).astype(jnp.bfloat16)          # (TB, 128) bf16

    # Shared Linear(128, 256) + ReLU -- single dense K=128 matmul.
    h1 = jnp.dot(h0, w1_ref[...], preferred_element_type=jnp.float32) + b1
    h1 = jnp.maximum(h1, 0.0).astype(jnp.bfloat16)           # (TB, 256) bf16

    # Final Linear(256, out) -- lane-dense (padded to mult. of 128), full store.
    out_ref[...] = jnp.dot(h1, w2_ref[...],
                           preferred_element_type=jnp.float32) + b2


def critic_forward(state, action, params):
    """state: (B, input_dim) f32, action: (B, act_dim) f32 -> (B, out_dim) f32."""
    B, in_dim = state.shape
    act_dim = action.shape[1]
    out_dim = params["out_dim"]
    n_out_pad = params["w2p"].shape[1]
    n_bias = params["biases"].shape[1]

    # Grid / tile selection:
    #   * grid >= 2 so both v7x TensorCores get work (harmless on v5e/v6e)
    #   * TB rounded up to 16 rows (bf16 sublane packing); padding waste is
    #     bounded by <16 rows per tile instead of up to TB-1 rows.
    #   (On v6e a TB that is a multiple of 256 maps to full MXU passes; we
    #    prefer 16-alignment here to avoid padding cliffs at odd batch sizes.)
    grid_n = max(2, _cdiv(B, TB_MAX))
    TB = _round_up(_cdiv(B, grid_n), 16)
    B_pad = grid_n * TB

    if B_pad != B:
        state = jnp.pad(state, ((0, B_pad - B), (0, 0)))
        action = jnp.pad(action, ((0, B_pad - B), (0, 0)))

    flops = 2 * B_pad * ((in_dim + act_dim) * H1 + H1 * H2 + H2 * n_out_pad)
    bytes_accessed = (
        4 * B_pad * (in_dim + act_dim)                       # streamed f32 inputs
        + 2 * ((in_dim + act_dim) * H1 + H1 * H2 + H2 * n_out_pad)  # bf16 weights
        + 4 * n_bias                                         # packed f32 biases
        + 4 * B_pad * n_out_pad                              # f32 output tiles
    )

    out_padded = pl.pallas_call(
        critic_kernel,
        out_shape=jax.ShapeDtypeStruct((B_pad, n_out_pad), jnp.float32),
        grid=(grid_n,),
        in_specs=[
            pl.BlockSpec((TB, in_dim), lambda i: (i, 0)),        # streamed state tile
            pl.BlockSpec((TB, act_dim), lambda i: (i, 0)),       # streamed action tile
            pl.BlockSpec((in_dim, H1), lambda i: (0, 0)),        # [Ws | 0]   (bf16, resident)
            pl.BlockSpec((act_dim, H1), lambda i: (0, 0)),       # [0 | Wa]   (bf16, resident)
            pl.BlockSpec((H1, H2), lambda i: (0, 0)),            # W1         (bf16, resident)
            pl.BlockSpec((H2, n_out_pad), lambda i: (0, 0)),     # W2 padded  (bf16, resident)
            pl.BlockSpec((1, n_bias), lambda i: (0, 0)),         # packed f32 biases
        ],
        out_specs=pl.BlockSpec((TB, n_out_pad), lambda i: (i, 0)),
        compiler_params=pltpu.CompilerParams(
            dimension_semantics=("parallel",),                   # v7x: 2 TCs split batch
            vmem_limit_bytes=32 * 1024 * 1024,                   # headroom over v5e's 16 MiB default
        ),
        cost_estimate=pl.CostEstimate(
            flops=flops, transcendentals=0, bytes_accessed=bytes_accessed),
    )(state, action, params["w_s"], params["w_a"], params["w1p"],
      params["w2p"], params["biases"])

    return out_padded[:B, :out_dim]


def init_params(key, input_dim, output_dim):
    """PyTorch-style init U(-1/sqrt(fan_in), 1/sqrt(fan_in)); then pre-fuse/pad
    the weights into the bf16 layout the kernel consumes."""
    def linear(k, fan_in, fan_out):
        kw, kb = jax.random.split(k)
        bound = 1.0 / jnp.sqrt(jnp.float32(fan_in))
        w = jax.random.uniform(kw, (fan_in, fan_out), jnp.float32, -bound, bound)
        b = jax.random.uniform(kb, (1, fan_out), jnp.float32, -bound, bound)
        return w, b

    k1, k2, k3, k4 = jax.random.split(key, 4)
    ws, bs = linear(k1, input_dim, 64)          # state_layer
    wa, ba = linear(k2, output_dim, 64)         # action_layer
    w1, b1 = linear(k3, H1, H2)                 # shared_layers[0]
    w2, b2 = linear(k4, H2, output_dim)         # shared_layers[2]

    # bf16 operand storage (accumulation stays f32 in the kernel).
    ws_bf = ws.astype(jnp.bfloat16)
    wa_bf = wa.astype(jnp.bfloat16)
    w1_bf = w1.astype(jnp.bfloat16)
    w2_bf = w2.astype(jnp.bfloat16)

    # Split-K block-diagonal first layer:
    #   state @ [Ws | 0] + action @ [0 | Wa]  ==  [s | a]
    w_s = jnp.zeros((input_dim, H1), jnp.bfloat16).at[:, :64].set(ws_bf)
    w_a = jnp.zeros((output_dim, H1), jnp.bfloat16).at[:, 64:].set(wa_bf)
    b_sa = jnp.concatenate([bs, ba], axis=1)    # (1, 128) f32

    # Lane-dense final layer: pad columns to a multiple of 128 (zero-filled).
    n_out_pad = _round_up(output_dim, 128)
    w2p = jnp.zeros((H2, n_out_pad), jnp.bfloat16).at[:, :output_dim].set(w2_bf)
    b2p = jnp.zeros((1, n_out_pad), jnp.float32).at[:, :output_dim].set(b2)

    # Pack all f32 biases into one VMEM buffer (single DMA descriptor).
    biases = jnp.concatenate([b_sa, b1, b2p], axis=1)  # (1, 128 + 256 + n_out_pad)

    return {
        # kernel-facing (bf16 / fused / padded / packed)
        "w_s": w_s, "w_a": w_a, "w1p": w1_bf, "w2p": w2p, "biases": biases,
        "out_dim": output_dim,
        # bf16-operand copies kept only for the reference check
        "ws": ws_bf, "bs": bs, "wa": wa_bf, "ba": ba,
        "w1": w1_bf, "b1": b1, "w2": w2_bf, "b2": b2,
    }


def reference_forward(state, action, p):
    """Pure-JAX reference with the same bf16-operand / f32-accumulation numerics."""
    f32 = jnp.float32
    s = jax.nn.relu(jnp.dot(state.astype(jnp.bfloat16), p["ws"],
                            preferred_element_type=f32) + p["bs"])
    a = jax.nn.relu(jnp.dot(action.astype(jnp.bfloat16), p["wa"],
                            preferred_element_type=f32) + p["ba"])
    h = jnp.concatenate([s, a], axis=1).astype(jnp.bfloat16)
    h = jax.nn.relu(jnp.dot(h, p["w1"], preferred_element_type=f32) + p["b1"])
    return jnp.dot(h.astype(jnp.bfloat16), p["w2"],
                   preferred_element_type=f32) + p["b2"]


if __name__ == "__main__":
    batch = 2
    input_dim = 16   # state dimension
    output_dim = 8   # action dimension (also the critic output width)

    key = jax.random.PRNGKey(0)
    kp, ks, ka = jax.random.split(key, 3)

    params = init_params(kp, input_dim, output_dim)
    state = jax.random.normal(ks, (batch, input_dim), jnp.float32)
    action = jax.random.normal(ka, (batch, output_dim), jnp.float32)

    out = critic_forward(state, action, params)
    out = jax.block_until_ready(out)

    ref = reference_forward(state, action, params)
    assert out.shape == (batch, output_dim)
    assert jnp.allclose(out, ref, atol=1e-2, rtol=1e-2), "mismatch vs JAX reference"

    print("KERNEL_OK")
</pallas_src>

<mosaic_0001>
module attributes {stable_mosaic.version = 11 : i64} {
  func.func @critic_kernel(%arg0: i32, %arg1: memref<16x16xf32, #tpu.memory_space<vmem>>, %arg2: memref<16x8xf32, #tpu.memory_space<vmem>>, %arg3: memref<16x128xbf16, #tpu.memory_space<vmem>>, %arg4: memref<8x128xbf16, #tpu.memory_space<vmem>>, %arg5: memref<128x256xbf16, #tpu.memory_space<vmem>>, %arg6: memref<256x128xbf16, #tpu.memory_space<vmem>>, %arg7: memref<1x512xf32, #tpu.memory_space<vmem>>, %arg8: memref<16x128xf32, #tpu.memory_space<vmem>>) attributes {dimension_semantics = [#tpu.dimension_semantics<parallel>], iteration_bounds = array<i64: 2>, scalar_prefetch = 0 : i64, scratch_operands = 0 : i64, tpu.core_type = #tpu.core_type<tc>, window_params = [{transform_indices = @transform_0, window_bounds = array<i64: 16, 16>}, {transform_indices = @transform_1, window_bounds = array<i64: 16, 8>}, {pipeline_mode = #tpu.pipeline_mode<synchronous>, transform_indices = @transform_2, window_bounds = array<i64: 16, 128>}, {pipeline_mode = #tpu.pipeline_mode<synchronous>, transform_indices = @transform_3, window_bounds = array<i64: 8, 128>}, {pipeline_mode = #tpu.pipeline_mode<synchronous>, transform_indices = @transform_4, window_bounds = array<i64: 128, 256>}, {pipeline_mode = #tpu.pipeline_mode<synchronous>, transform_indices = @transform_5, window_bounds = array<i64: 256, 128>}, {pipeline_mode = #tpu.pipeline_mode<synchronous>, transform_indices = @transform_6, window_bounds = array<i64: 1, 512>}, {transform_indices = @transform_7, window_bounds = array<i64: 16, 128>}]} {
    %c0 = arith.constant 0 : index
    %c0_0 = arith.constant 0 : index
    %0 = vector.load %arg7[%c0, %c0_0] : memref<1x512xf32, #tpu.memory_space<vmem>>, vector<1x128xf32>
    %c0_1 = arith.constant 0 : index
    %c128 = arith.constant 128 : index
    %1 = vector.load %arg7[%c0_1, %c128] : memref<1x512xf32, #tpu.memory_space<vmem>>, vector<1x256xf32>
    %c0_2 = arith.constant 0 : index
    %c384 = arith.constant 384 : index
    %2 = vector.load %arg7[%c0_2, %c384] : memref<1x512xf32, #tpu.memory_space<vmem>>, vector<1x128xf32>
    %c0_3 = arith.constant 0 : index
    %c0_4 = arith.constant 0 : index
    %3 = vector.load %arg1[%c0_3, %c0_4] : memref<16x16xf32, #tpu.memory_space<vmem>>, vector<16x16xf32>
    %4 = arith.truncf %3 : vector<16x16xf32> to vector<16x16xbf16>
    %c0_5 = arith.constant 0 : index
    %c0_6 = arith.constant 0 : index
    %5 = vector.load %arg2[%c0_5, %c0_6] : memref<16x8xf32, #tpu.memory_space<vmem>>, vector<16x8xf32>
    %6 = arith.truncf %5 : vector<16x8xf32> to vector<16x8xbf16>
    %c0_7 = arith.constant 0 : index
    %c0_8 = arith.constant 0 : index
    %7 = vector.load %arg3[%c0_7, %c0_8] : memref<16x128xbf16, #tpu.memory_space<vmem>>, vector<16x128xbf16>
    %cst = arith.constant dense<0.000000e+00> : vector<16x128xf32>
    %8 = tpu.matmul %4, %7, %cst {dimension_numbers = #tpu.dot_dimension_numbers<[1], [0], [0], [1], [0, 0, 1, 1], [], []>} : vector<16x16xbf16>, vector<16x128xbf16>, vector<16x128xf32> -> vector<16x128xf32>
    %c0_9 = arith.constant 0 : index
    %c0_10 = arith.constant 0 : index
    %9 = vector.load %arg4[%c0_9, %c0_10] : memref<8x128xbf16, #tpu.memory_space<vmem>>, vector<8x128xbf16>
    %cst_11 = arith.constant dense<0.000000e+00> : vector<16x128xf32>
    %10 = tpu.matmul %6, %9, %cst_11 {dimension_numbers = #tpu.dot_dimension_numbers<[1], [0], [0], [1], [0, 0, 1, 1], [], []>} : vector<16x8xbf16>, vector<8x128xbf16>, vector<16x128xf32> -> vector<16x128xf32>
    %11 = arith.addf %8, %10 : vector<16x128xf32>
    %12 = vector.broadcast %0 : vector<1x128xf32> to vector<16x128xf32>
    %13 = arith.addf %11, %12 : vector<16x128xf32>
    %cst_12 = arith.constant 0.000000e+00 : f32
    %14 = vector.broadcast %cst_12 : f32 to vector<16x128xf32>
    %15 = arith.maximumf %13, %14 : vector<16x128xf32>
    %16 = arith.truncf %15 : vector<16x128xf32> to vector<16x128xbf16>
    %c0_13 = arith.constant 0 : index
    %c0_14 = arith.constant 0 : index
    %17 = vector.load %arg5[%c0_13, %c0_14] : memref<128x256xbf16, #tpu.memory_space<vmem>>, vector<128x256xbf16>
    %cst_15 = arith.constant dense<0.000000e+00> : vector<16x256xf32>
    %18 = tpu.matmul %16, %17, %cst_15 {dimension_numbers = #tpu.dot_dimension_numbers<[1], [0], [0], [1], [0, 0, 1, 1], [], []>} : vector<16x128xbf16>, vector<128x256xbf16>, vector<16x256xf32> -> vector<16x256xf32>
    %19 = vector.broadcast %1 : vector<1x256xf32> to vector<16x256xf32>
    %20 = arith.addf %18, %19 : vector<16x256xf32>
    %cst_16 = arith.constant 0.000000e+00 : f32
    %21 = vector.broadcast %cst_16 : f32 to vector<16x256xf32>
    %22 = arith.maximumf %20, %21 : vector<16x256xf32>
    %23 = arith.truncf %22 : vector<16x256xf32> to vector<16x256xbf16>
    %c0_17 = arith.constant 0 : index
    %c0_18 = arith.constant 0 : index
    %24 = vector.load %arg6[%c0_17, %c0_18] : memref<256x128xbf16, #tpu.memory_space<vmem>>, vector<256x128xbf16>
    %cst_19 = arith.constant dense<0.000000e+00> : vector<16x128xf32>
    %25 = tpu.matmul %23, %24, %cst_19 {dimension_numbers = #tpu.dot_dimension_numbers<[1], [0], [0], [1], [0, 0, 1, 1], [], []>} : vector<16x256xbf16>, vector<256x128xbf16>, vector<16x128xf32> -> vector<16x128xf32>
    %26 = vector.broadcast %2 : vector<1x128xf32> to vector<16x128xf32>
    %27 = arith.addf %25, %26 : vector<16x128xf32>
    %c0_20 = arith.constant 0 : index
    %c0_21 = arith.constant 0 : index
    %28 = vector.load %arg8[%c0_20, %c0_21] : memref<16x128xf32, #tpu.memory_space<vmem>>, vector<16x128xf32>
    tpu.vector_store %arg8[%c0_20, %c0_21], %27 {strides = array<i32>} : memref<16x128xf32, #tpu.memory_space<vmem>>, vector<16x128xf32>,
    return
  }
  func.func @transform_0(%arg0: i32) -> (i32, i32) {
    %c0_i32 = arith.constant 0 : i32
    %c0_i32_0 = arith.constant 0 : i32
    return %arg0, %c0_i32 : i32, i32
  }
  func.func @transform_1(%arg0: i32) -> (i32, i32) {
    %c0_i32 = arith.constant 0 : i32
    %c0_i32_0 = arith.constant 0 : i32
    return %arg0, %c0_i32 : i32, i32
  }
  func.func @transform_2(%arg0: i32) -> (i32, i32) {
    %c0_i32 = arith.constant 0 : i32
    %c0_i32_0 = arith.constant 0 : i32
    %c0_i32_1 = arith.constant 0 : i32
    return %c0_i32, %c0_i32_0 : i32, i32
  }
  func.func @transform_3(%arg0: i32) -> (i32, i32) {
    %c0_i32 = arith.constant 0 : i32
    %c0_i32_0 = arith.constant 0 : i32
    %c0_i32_1 = arith.constant 0 : i32
    return %c0_i32, %c0_i32_0 : i32, i32
  }
  func.func @transform_4(%arg0: i32) -> (i32, i32) {
    %c0_i32 = arith.constant 0 : i32
    %c0_i32_0 = arith.constant 0 : i32
    %c0_i32_1 = arith.constant 0 : i32
    return %c0_i32, %c0_i32_0 : i32, i32
  }
  func.func @transform_5(%arg0: i32) -> (i32, i32) {
    %c0_i32 = arith.constant 0 : i32
    %c0_i32_0 = arith.constant 0 : i32
    %c0_i32_1 = arith.constant 0 : i32
    return %c0_i32, %c0_i32_0 : i32, i32
  }
  func.func @transform_6(%arg0: i32) -> (i32, i32) {
    %c0_i32 = arith.constant 0 : i32
    %c0_i32_0 = arith.constant 0 : i32
    %c0_i32_1 = arith.constant 0 : i32
    return %c0_i32, %c0_i32_0 : i32, i32
  }
  func.func @transform_7(%arg0: i32) -> (i32, i32) {
    %c0_i32 = arith.constant 0 : i32
    %c0_i32_0 = arith.constant 0 : i32
    return %arg0, %c0_i32 : i32, i32
  }
}

</mosaic_0001>

<bundles_post_ra>
// kernel: tpu_custom_call.1
= control target key start
LH: loop header
LB: loop body
LE: loop exit
PB: predicated region body
PF: predicated region fallthrough
CT: control target
= control target key end

     0   :  { %12 = vsyncpa [#allocation3], 0  ;;  %s1475_s0 = inlined_call_operand.vmem [shape: f32[32,16], index: 0, kind: input, shape index: {}]   ;;  %s1476_s1 = inlined_call_operand.vmem [shape: f32[32,8], index: 1, kind: input, shape index: {}]   ;;  %s1477_s2 = inlined_call_operand.vmem [shape: bf16[16,128], index: 2, kind: input, shape index: {}]   ;;  %s1478_s3 = inlined_call_operand.vmem [shape: bf16[8,128], index: 3, kind: input, shape index: {}]   ;;  %s1479_s4 = inlined_call_operand.hbm [shape: bf16[128,256], index: 4, kind: input, shape index: {}]   ;;  %s1480_s5 = inlined_call_operand.hbm [shape: bf16[256,128], index: 5, kind: input, shape index: {}]   ;;  %s1481_s6 = inlined_call_operand.vmem [shape: f32[1,512], index: 6, kind: input, shape index: {}]   ;;  %s1482_s7 = inlined_call_operand.hbm [shape: f32[32,128], index: 7, kind: output, shape index: {}]  }
   0x1   :  { %13 = vsyncpa [#allocation6], 0 }
   0x2   :  { %14 = vsyncpa [#allocation4], 0 }
   0x3   :  { %16 = vsyncpa [#allocation4 + $0x1], 0  ;;  %s1283_s24 = smov 0   ;;  %s1285_s25 = smov 0  }
   0x4   :  { %s1287_s26 = smov 0   ;;  %s1289_s27 = smov 0  }
   0x5 LB: > { %s1304_s28 = sadd.s32 4294967295, %s1229_s27   ;;  %s899_s29 = sadd.s32 4294967294, %s1229_s27   ;;  %s1229_s27 = sphi %s1289_s27, %s1502_s27   ;;  %s1225_s26 = sphi %s1287_s26, %s1501_s26   ;;  %s1221_s25 = sphi %s1285_s25, %s1500_s25   ;;  %s1217_s24 = sphi %s1283_s24, %s1499_s24  }
   0x6   : > { %s1308_s30 = sadd.s32 1, %s1229_s27   ;;  %s186_s8 = sadd.s32 1, %s1225_s26 }
   0x7   : > { %s183_s9 = ssub.s32 %s1229_s27, %s1308_s30  ;;  %p196_p0 = scmp.ne.s32.totalorder %s1225_s26, %s1221_s25 }
   0x8   : > { %p184_p1 = scmp.eq.s32.totalorder %s183_s9, 0  ;;  %p197_p2 = scmp.eq.s32.totalorder %s1304_s28, 1 }
   0x9   : > { %p202_p3 = scmp.ne.s32.totalorder %s1221_s25, %s1217_s24  ;;  %p203_p4 = scmp.eq.s32.totalorder %s899_s29, 1 }
   0xa   : > { %s1319_s10 = scalar_select %p184_p1, %s1225_s26, %s186_s8  }
   0xb   : > { %p1321_p5 = por %p197_p2, %p196_p0  ;;  %p1325_p6 = por %p203_p4, %p202_p3 }
   0xc   : > { %1486 = sst [smem:[#allocation11_spill]] %s1319_s10  ;;  %p900_p7 = scmp.ge.s32.totalorder %s1229_s27, 1 }
   0xd   : > { %s1487_s11 = scalar_select %p1321_p5, 1, 0 }
   0xe   : > { %s1488_s12 = scalar_select %p1325_p6, 1, 0 }
   0xf   : > { %p210_p8 = scmp.lt.s32.totalorder %s1229_s27, 3  ;;  %p1483_p9 = scmp.eq.s32.totalorder %s1304_s28, 0 }
  0x10   : > { %s1231_s14 = smov [#allocation2]   ;;  %s1232_s17 = smov [#allocation5]  }
  0x11   : > { %p1332_p10 = pnand %p900_p7, %p210_p8  ;;  %s228_s15 = sshll.u32 %s1231_s14, 4  ;;  %s229_s15 = int_to_ptr.vmem [resolvable:$true] %s228_s15 }
  0x12   : > { %s241_s18 = sshll.u32 %s1232_s17, 4  ;;  %s1103_s21 = scalar_lea.hbm %s1479_s4, 2048  ;;  %s1344_s18 = int_to_ptr.vmem [resolvable:$true] %s241_s18 }
  0x13   : > { %s1489_s13 = scalar_select %p1332_p10, 1, 0 }
  0x14   : > { %p1003_p11 = pneg %p1332_p10  ;;  %p1104_p13 = scmp.ne.s32.totalorder %s1479_s4, %s1103_s21 }
  0x15   : > { %p1110_p3 = scmp.lt.u32.totalorder %s1103_s21, %s1479_s4 }
  0x16   : > { %p1340_p12 = pnand %p1483_p9, %p1003_p11 }
  0x18   : > { %p1105_p0 = pneg %p1340_p12 }
  0x1a   : > { %p1106_p1 = pnand %p1105_p0, %p1104_p13 }
  0x1c   : > { %p1107_p2 = pneg %p1106_p1 }
  0x1e   : > { %p1112_p4 = pnand %p1110_p3, %p1107_p2 }
  0x20   : > { %1115 = shalt.err (!%p1112_p4)
}
  0x21   : > { %s1116_s9 = scalar_lea.vmem %s229_s15, 2048  ;;  %p1124_p9 = scmp.lt.s32.totalorder %s229_s15, %s229_s15 }
  0x22   : > { %p1117_p7 = scmp.ne.s32.totalorder %s229_s15, %s1116_s9  ;;  %p1125_p6 = scmp.lt.s32.totalorder %s1116_s9, %s1116_s9 }
  0x24   : > { %p1119_p8 = pnand %p1117_p7, %p1105_p0  ;;  %p1126_p5 = por %p1125_p6, %p1124_p9 }
  0x26   : > { %p1120_p11 = pneg %p1119_p8 }
  0x28   : > { %p1127_p10 = pnand %p1126_p5, %p1120_p11 }
  0x2a   : > { %1130 = shalt.err (!%p1127_p10)
}
  0x2b   : > { %s1233_s14 = smov 128   ;;  %s1234_s17 = smov 8  }
  0x2c   : > { %1006 = dma.hbm_to_vmem [thread:$0]  (!%p1340_p12), %s1479_s4, 2048, %s229_s15, [#allocation3], %s1233_s14, %s1233_s14, %s1234_s17  }
  0x2d   : > { %s1131_s23 = scalar_lea.hbm %s1480_s5, 2048 }
  0x2e   : > { %p1132_p13 = scmp.ne.s32.totalorder %s1480_s5, %s1131_s23  ;;  %p1138_p9 = scmp.lt.u32.totalorder %s1131_s23, %s1480_s5 }
  0x30   : > { %p1134_p5 = pnand %p1132_p13, %p1105_p0 }
  0x32   : > { %p1135_p6 = pneg %p1134_p5 }
  0x34   : > { %p1140_p10 = pnand %p1138_p9, %p1135_p6 }
  0x36   : > { %1143 = shalt.err (!%p1140_p10)
}
  0x37   : > { %s1144_s15 = scalar_lea.vmem %s1344_s18, 2048  ;;  %p1152_p4 = scmp.lt.s32.totalorder %s1344_s18, %s1344_s18 }
  0x38   : > { %p1145_p1 = scmp.ne.s32.totalorder %s1344_s18, %s1144_s15  ;;  %p1153_p7 = scmp.lt.s32.totalorder %s1144_s15, %s1144_s15 }
  0x3a   : > { %p1147_p2 = pnand %p1145_p1, %p1105_p0  ;;  %p1154_p8 = por %p1153_p7, %p1152_p4 }
  0x3c   : > { %p1148_p3 = pneg %p1147_p2 }
  0x3e   : > { %p1155_p11 = pnand %p1154_p8, %p1148_p3 }
  0x40   : > { %1158 = shalt.err (!%p1155_p11)
}
  0x41   : > { %s1235_s10 = smov 64   ;;  %s1236_s14 = smov 4  }
  0x42   : > { %1009 = dma.hbm_to_vmem [thread:$0]  (!%p1340_p12), %s1480_s5, 2048, %s1344_s18, [#allocation6], %s1235_s10, %s1235_s10, %s1236_s14  }
  0x43   : > { %p1491_p13 = scmp.ne.s32.totalorder %s1489_s13, 0 }
  0x44   : > { %p1492_p0 = scmp.eq.s32.totalorder (!%p1491_p13), %s1304_s28, 0 }
  0x45   : > { %278 = sbr.rel (%p1491_p13) target bundleno = 768 (0x300), region = 48 }
  0x4c   : > { %1204 = dma.done.wait (%p1492_p0), [#allocation3], 2048   ;;  %p1493_p5 = pmov %p1492_p0 }
  0x4d   : > { %p1494_p6 = pmov %p1492_p0 }
  0x4e   : > { %1206 = vsyncadd (%p1493_p5), [#allocation3], 4294965248 }
  0x4f   : > { %1208 = dma.done.wait (%p1494_p6), [#allocation6], 2048   ;;  %p1495_p9 = pmov %p1492_p0 }
  0x50   : > { %s908_s16 = sshll.u32 %s1304_s28, 1  ;;  %v1237_v0 = vmov 0.0   ;;  %vm1238_vm0 = vmmov 0   ;;  %vm349_vm1 = vcmask 1043456   ;;  %v344_v1 = vld [vmem:[%s1478_s3] sm:$0xf]  ;;  %v473_v59 = vlaneseq }
  0x51   : > { %1210 = vsyncadd (%p1495_p9), [#allocation6], 4294965248  ;;  %981 = vmatprep.subr.bf16.mxu0 %v1237_v0  ;;  %987 = vmatprep.subr.bf16.mxu1 %v1237_v0  ;;  %p320_p12 = scmp.lt.s32.totalorder %s908_s16, 3  ;;  %v351_v2 = vsel %vm349_vm1, %v344_v1, 0  ;;  %v1062_v3 = vld [vmem:[%s1477_s2] sm:$0xff]   ;;  %vm345_vm2 = vcmask 64512  }
  0x52   : > { %983 = vmatprep.mubr.msk.bf16.mxu0 %vm1238_vm0, %v1237_v0  ;;  %989 = vmatprep.mubr.msk.bf16.mxu1 %vm1238_vm0, %v1237_v0  ;;  %vm400_vm3 = vcmask 130048   ;;  %v1063_v10 = vld [vmem:[#allocation2] ss:$8 sps:$4 sm:$0xff]   ;;  %v1065_v11 = vld [vmem:[#allocation2 + $0x4] ss:$8 sps:$4 sm:$0xff]   ;;  %v1239_v26 = vmov 0  }
  0x53   : > { %s1504_s16 = smov (!%p320_p12, %s908_s16), 3  ;;  %982 = vmatpush3.bf16.msra.mxu0 %v351_v2  ;;  %988 = vmatpush3.bf16.msra.mxu1 %v1062_v3  ;;  %v1068_v12 = vld [vmem:[#allocation2 + $0x14] ss:$8 sps:$4 sm:$0xff]   ;;  %v1066_v13 = vld [vmem:[#allocation2 + $0x10] ss:$8 sps:$4 sm:$0xff]   ;;  %v1087_v27 = vld [vmem:[#allocation5 + $0x40] sm:$0xff]  }
  0x54   : > { %s909_s13 = sshll.u32 %s1504_s16, 3  ;;  %563 = vmatprep.subr.bf16.mxu0 %v1065_v11  ;;  %v1071_v14 = vld [vmem:[#allocation2 + $0x24] ss:$8 sps:$4 sm:$0xff]   ;;  %v1069_v15 = vld [vmem:[#allocation2 + $0x20] ss:$8 sps:$4 sm:$0xff]   ;;  %959 = vmatprep.subr.bf16.mxu1 %v1087_v27  ;;  %v1091_v31 = vld [vmem:[#allocation5 + $0x50] sm:$0xff]  }
  0x55   : > { %s329_s21 = scalar_lea.vmem %s1476_s1, %s909_s13  ;;  %s323_s29 = scalar_lea.vmem %s1475_s0, %s909_s13  ;;  %v1074_v16 = vld [vmem:[#allocation2 + $0x34] ss:$8 sps:$4 sm:$0xff]   ;;  %v1072_v17 = vld [vmem:[#allocation2 + $0x30] ss:$8 sps:$4 sm:$0xff]   ;;  %v1077_v18 = vld [vmem:[#allocation2 + $0x44] ss:$8 sps:$4 sm:$0xff]  }
  0x56   : > { %v339_v4 = vld [vmem:[%s329_s21] sm:$0xff]  ;;  %v340_v5 = vld [vmem:[%s329_s21 + $0x8] sm:$0xff]  ;;  %v1080_v20 = vld [vmem:[#allocation2 + $0x54] ss:$8 sps:$4 sm:$0xff]   ;;  %v474_v60 = vshrl.u32 %v473_v59, 7  ;;  %s316_s13 = sand.u32 1, %s1221_s25  }
  0x57   : > { %v341_v6 = vpack.c.bf16 %v340_v5, %v339_v4  ;;  %v336_v7 = vld [vmem:[%s323_s29] sm:$0xff]  ;;  %v337_v8 = vld [vmem:[%s323_s29 + $0x8] sm:$0xff]  ;;  %v1078_v21 = vld [vmem:[#allocation2 + $0x50] ss:$8 sps:$4 sm:$0xff]   ;;  %s907_s18 = sshll.u32 %s316_s13, 4  ;;  %s954_s29 = sshll.u32 %s1304_s28, 8 }
  0x58   : > { %v338_v9 = vpack.c.bf16 %v337_v8, %v336_v7  ;;  %v1075_v19 = vld [vmem:[#allocation2 + $0x40] ss:$8 sps:$4 sm:$0xff]   ;;  %v1083_v22 = vld [vmem:[#allocation2 + $0x64] ss:$8 sps:$4 sm:$0xff]   ;;  %v1086_v24 = vld [vmem:[#allocation2 + $0x74] ss:$8 sps:$4 sm:$0xff]   ;;  %s1432_s15 = scalar_lea.hbm %s1482_s7, %s954_s29 }
  0x59   : > { %984 = vmatmul.mubr.msk.bf16.vlgmr.msra.gmra.mrb[0].mxu0 %vm345_vm2, %v341_v6  ;;  %v1081_v23 = vld [vmem:[#allocation2 + $0x60] ss:$8 sps:$4 sm:$0xff]   ;;  %v1084_v25 = vld [vmem:[#allocation2 + $0x70] ss:$8 sps:$4 sm:$0xff]   ;;  %v475_v61 = vsub.s32 0, %v474_v60  ;;  %v479_v63 = vsub.s32 1, %v474_v60 }
  0x5a   : > { %990 = vmatmul.mubr.msk.bf16.vlgmr.msra.gmra.mrb[0].mxu1 %vm400_vm3, %v338_v9  ;;  %564 = vmatpush1.bf16.msra.mxu0 %v1063_v10  ;;  %v1088_v28 = vld [vmem:[#allocation5] sm:$0xff]   ;;  %v1089_v29 = vld [vmem:[#allocation5 + $0x48] sm:$0xff]   ;;  %v1092_v32 = vld [vmem:[#allocation5 + $0x10] sm:$0xff]   ;;  %s318_s22 = scalar_lea.vmem [#allocation7], %s907_s18  ;;  %s1434_s10 = scalar_lea.sflag [#allocation4], %s316_s13 }
  0x5b   : > { %565 = vmatprep.subr.bf16.mxu0 %v1068_v12  ;;  %595 = vmatprep.mubr.bf16.mxu0 %v1239_v26  ;;  %v1090_v30 = vld [vmem:[#allocation5 + $0x8] sm:$0xff]   ;;  %v1093_v33 = vld [vmem:[#allocation5 + $0x58] sm:$0xff]   ;;  %v1095_v35 = vld [vmem:[#allocation5 + $0x60] sm:$0xff]   ;;  %s803_s23 = sshll.u32 %s318_s22, 4  ;;  %p1496_p1 = scmp.ne.s32.totalorder %s1487_s11, 0  ;;  %s1427_s23 = int_to_ptr.vmem [resolvable:$true] %s803_s23 }
  0x5c   : > { %960 = vmatpush3.bf16.msra.mxu1 %v1088_v28  ;;  %v1094_v34 = vld [vmem:[#allocation5 + $0x18] sm:$0xff]   ;;  %v1096_v36 = vld [vmem:[#allocation5 + $0x20] sm:$0xff]   ;;  %v1097_v37 = vld [vmem:[#allocation5 + $0x68] sm:$0xff]   ;;  %s1159_s14 = scalar_lea.vmem %s1427_s23, 256  ;;  %s1240_s28 = smov [#allocation7]  }
  0x5d   : > { %961 = vmatprep.subr.bf16.mxu1 %v1089_v29  ;;  %v915_v40 = vld [vmem:[%s1481_s6] ss:$0 sm:$0xff]  ;;  %v1098_v54 = vld [vmem:[#allocation5 + $0x28] sm:$0xff]   ;;  %v1099_v55 = vld [vmem:[#allocation5 + $0x70] sm:$0xff]   ;;  %p1160_p10 = scmp.ne.s32.totalorder %s1427_s23, %s1159_s14  ;;  %s1163_s17 = sshll.u32 %s1240_s28, 4  ;;  %s1164_s17 = int_to_ptr.vmem [resolvable:$false] %s1163_s17 }
  0x5e   : > { %566 = vmatpush1.bf16.msra.mxu0 %v1066_v13  ;;  %v1100_v56 = vld [vmem:[#allocation5 + $0x30] sm:$0xff]   ;;  %v1101_v57 = vld [vmem:[#allocation5 + $0x78] sm:$0xff]   ;;  %v334_v62 = vld [vmem:[%s1481_s6 + $0x1] sm:$0x3]  ;;  %s1165_s19 = scalar_lea.vmem %s1164_s17, 512  ;;  %p1166_p4 = scmp.lt.s32.totalorder %s1427_s23, %s1164_s17 }
  0x5f   : > { %567 = vmatprep.subr.bf16.mxu0 %v1071_v14  ;;  %v1102_v58 = vld [vmem:[#allocation5 + $0x38] sm:$0xff]   ;;  %v476_v0 = vrot.slane %v334_v62, %v475_v61  ;;  %v480_v1 = vrot.slane %v334_v62, %v479_v63  ;;  %p1161_p2 = pnand %p1160_p10, %p1496_p1  ;;  %p1167_p7 = scmp.lt.s32.totalorder %s1165_s19, %s1159_s14 }
  0x60   : > { %962 = vmatpush3.bf16.msra.mxu1 %v1090_v30 }
  0x61   : > { %963 = vmatprep.subr.bf16.mxu1 %v1091_v31  ;;  %p1162_p3 = pneg %p1161_p2  ;;  %p1168_p8 = por %p1167_p7, %p1166_p4 }
  0x62   : > { %568 = vmatpush1.bf16.msra.mxu0 %v1069_v15 }
  0x63   : > { %569 = vmatprep.subr.bf16.mxu0 %v1074_v16  ;;  %p1169_p11 = pnand %p1168_p8, %p1162_p3 }
  0x64   : > { %964 = vmatpush3.bf16.msra.mxu1 %v1092_v32 }
  0x65   : > { %965 = vmatprep.subr.bf16.mxu1 %v1093_v33 }
  0x66   : > { %570 = vmatpush1.bf16.msra.mxu0 %v1072_v17  ;;  %v932_v17 = vld [vmem:[%s1481_s6 + $0x3] ss:$0 sm:$0xff] }
  0x67   : > { %571 = vmatprep.subr.bf16.mxu0 %v1077_v18 }
  0x68   : > { %966 = vmatpush3.bf16.msra.mxu1 %v1094_v34 }
  0x69   : > { %967 = vmatprep.subr.bf16.mxu1 %v1095_v35 }
  0x6a   : > { %572 = vmatpush1.bf16.msra.mxu0 %v1075_v19 }
  0x6b   : > { %573 = vmatprep.subr.bf16.mxu0 %v1080_v20 }
  0x6c   : > { %968 = vmatpush3.bf16.msra.mxu1 %v1096_v36 }
  0x6d   : > { %969 = vmatprep.subr.bf16.mxu1 %v1097_v37 }
  0x6e   : > { %574 = vmatpush1.bf16.msra.mxu0 %v1078_v21 }
  0x6f   : > { %575 = vmatprep.subr.bf16.mxu0 %v1083_v22 }
  0x70   : > { %970 = vmatpush3.bf16.msra.mxu1 %v1098_v54 }
  0x71   : > { %971 = vmatprep.subr.bf16.mxu1 %v1099_v55 }
  0x72   : > { %576 = vmatpush1.bf16.msra.mxu0 %v1081_v23 }
  0x73   : > { %577 = vmatprep.subr.bf16.mxu0 %v1086_v24 }
  0x74   : > { %972 = vmatpush3.bf16.msra.mxu1 %v1100_v56 }
  0x75   : > { %973 = vmatprep.subr.bf16.mxu1 %v1101_v57 }
  0x76   : > { %578 = vmatpush1.bf16.msra.mxu0 %v1084_v25 }
  0x78   : > { %974 = vmatpush3.bf16.msra.mxu1 %v1102_v58 }
 0x12c   : > { %v387_v38 = vpop.f32.mrb[0].mxu0 }
 0x12d   : > { %v985_v39 = vpop.f32.mrb[1].mxu0  ;;  %v438_v41 = vpop.f32.mrb[0].mxu1 }
 0x12e   : > { %v439_v42 = vadd.f32 %v438_v41, %v387_v38  ;;  %v390_v43 = vpop.f32.mrb[2].mxu0  ;;  %v991_v44 = vpop.f32.mrb[1].mxu1 }
 0x12f   : > { %v986_v45 = vpop.f32.mrb[3].mxu0  ;;  %v441_v46 = vpop.f32.mrb[2].mxu1 }
 0x130   : > { %v451_v47 = vadd.f32 %v915_v40, %v439_v42  ;;  %v442_v48 = vadd.f32 %v441_v46, %v390_v43  ;;  %v992_v49 = vpop.f32.mrb[3].mxu1 }
 0x132   : > { %v452_v50 = vadd.f32 %v915_v40, %v442_v48  ;;  %v453_v51 = vmax.f32 %v451_v47, 0.0 }
 0x134   : > { %v454_v52 = vmax.f32 %v452_v50, 0.0 }
 0x136   : > { %v455_v53 = vpack.c.bf16 %v454_v52, %v453_v51 }
 0x138   : > { %596 = vmatmul.mubr.bf16.vlgmr.msra.gmra.mrb[4].mxu0 %v455_v53 }
 0x20b   : > { %v597_v2 = vpop.f32.mrb[4].mxu0 }
 0x20c   : > { %v598_v3 = vadd.f32 %v597_v2, %v476_v0  ;;  %v599_v4 = vpop.f32.mrb[5].mxu0 }
 0x20d   : > { %v600_v5 = vadd.f32 %v599_v4, %v480_v1  ;;  %v601_v6 = vpop.f32.mrb[6].mxu0 }
 0x20e   : > { %v602_v7 = vadd.f32 %v601_v6, %v476_v0  ;;  %v603_v8 = vpop.f32.mrb[7].mxu0  ;;  %v606_v10 = vmax.f32 %v598_v3, 0.0 }
 0x20f   : > { %v604_v9 = vadd.f32 %v603_v8, %v480_v1  ;;  %v607_v12 = vmax.f32 %v600_v5, 0.0 }
 0x210   : > { %v608_v11 = vmax.f32 %v602_v7, 0.0 }
 0x211   : > { %v609_v13 = vmax.f32 %v604_v9, 0.0 }
 0x212   : > { %v610_v14 = vpack.c.bf16 %v608_v11, %v606_v10 }
 0x213   : > { %v611_v15 = vpack.c.bf16 %v609_v13, %v607_v12 }
 0x215   : > { %778 = vmatprep.mubr.bf16.mxu1 %v611_v15 }
 0x216   : > { %779 = vmatmul.mubr.bf16.vlgmr.msra.gmra.mrb[4].mxu1 %v610_v14 }
 0x2e9   : > { %v975_v16 = vpop.f32.mrb[4].mxu1 }
 0x2ea   : > { %v976_v18 = vpop.f32.mrb[5].mxu1 }
 0x2eb   : > { %v977_v19 = vadd.f32 %v976_v18, %v975_v16  ;;  %v978_v20 = vpop.f32.mrb[6].mxu1 }
 0x2ec   : > { %v979_v21 = vpop.f32.mrb[7].mxu1 }
 0x2ed   : > { %v781_v22 = vadd.f32 %v977_v19, %v932_v17  ;;  %v980_v23 = vadd.f32 %v979_v21, %v978_v20 }
 0x2ef   : > { %787 = vst [vmem:[%s318_s22] sm:$0xff] %v781_v22  ;;  %v784_v24 = vadd.f32 %v980_v23, %v932_v17 }
 0x2f1   : > { %788 = vst [vmem:[%s318_s22 + $0x8] sm:$0xff] %v784_v24 }
 0x2f2   : > { %1172 = shalt.err (!%p1169_p11)
}
 0x2f3   : > { %s1173_s16 = scalar_lea.hbm %s1432_s15, 256  ;;  %s1177_s20 = scalar_lea.hbm %s1482_s7, 512 }
 0x2f4   : > { %p1174_p13 = scmp.ne.s32.totalorder %s1432_s15, %s1173_s16  ;;  %p1178_p6 = scmp.lt.u32.totalorder %s1432_s15, %s1482_s7 }
 0x2f5   : > { %p1179_p9 = scmp.lt.u32.totalorder %s1177_s20, %s1173_s16  ;;  %p1181_p10 = scmp.lt.u32.totalorder %s1173_s16, %s1432_s15 }
 0x2f6   : > { %p1175_p0 = pnand %p1174_p13, %p1496_p1 }
 0x2f7   : > { %p1180_p12 = por %p1179_p9, %p1178_p6 }
 0x2f8   : > { %p1176_p5 = pneg %p1175_p0 }
 0x2f9   : > { %p1182_p2 = por %p1181_p10, %p1180_p12 }
 0x2fb   : > { %p1183_p3 = pnand %p1182_p2, %p1176_p5 }
 0x2fd   : > { %1186 = shalt.err (!%p1183_p3)
}
 0x2fe   : > { %s1241_s29 = smov 128   ;;  %s1242_s8 = smov 8  }
 0x2ff   : > { %1001 = dma.vmem_to_hbm [thread:$0]  (%p1496_p1), %s1427_s23, 256, %s1432_s15, %s1434_s10, %s1241_s29, %s1241_s29, %s1242_s8  }
 0x300 PF: > { %p1018_p4 = scmp.ge.s32.totalorder %s1229_s27, 2  ;;  %s818_s9 = sand.u32 1, %s1217_s24  }
 0x301   : > { %p1497_p7 = scmp.ne.s32.totalorder %s1488_s12, 0  ;;  %s819_s14 = scalar_lea.sflag [#allocation4], %s818_s9 }
 0x303   : > { %p1011_p8 = pnand %p1018_p4, %p1497_p7 }
 0x305   : > { %1212 = dma.done.wait (!%p1011_p8), %s819_s14, 256  }
 0x306   : > { %1214 = vsyncadd (!%p1011_p8), %s819_s14, 4294967040  ;;  %s1498_s28 = sld [smem:[#allocation11_spill]]  ;;  %p19_p11 = scmp.ge.s32.totalorder %s1308_s30, 4  }
 0x307   : > { %s1499_s24 = smov %s1221_s25  ;;  %s1500_s25 = smov %s1225_s26 }
 0x308   : > { %s1502_s27 = smov %s1308_s30  ;;  %21 = sbr.rel (!%p19_p11) target bundleno = 5 (0x5), region = 95 }
 0x30c   : > { %s1501_s26 = smov %s1498_s28 }
 0x30f   :  { %824 = vsyncpa [#allocation3], 1 }
 0x310   :  { %826 = vsyncpa [#allocation3 + $0x1], 1 }
 0x311   :  { %827 = vsyncpa [#allocation6], 1 }
 0x312   :  { %828 = vsyncpa [#allocation4], 1 }
 0x313   :  { %830 = vsyncpa [#allocation4 + $0x1], 1 }

</bundles_post_ra>
